<compile_context>
chip_gen: v6e
topology: v6e:2x2x1
jax: 0.10.0
libtpu: 0.0.40
codegen_flags: <defaults>
</compile_context>

<pallas_src>
import functools

import jax
import jax.numpy as jnp
from jax import lax
from jax.experimental import pallas as pl
from jax.experimental.pallas import tpu as pltpu

EPS = 1e-6


def _residual_ln_kernel(x_ref, w_ref, b_ref, gamma_ref, beta_ref, o_ref, *, d_model):
    # x_ref:  (tm, Dp)  rows of the flattened, lane-padded input
    # w_ref:  (Dp, Dp)  W^T + I, zero-padded (resident across the grid)
    # b_ref, gamma_ref, beta_ref: (1, Dp) f32, zero-padded
    x = x_ref[...]

    # y = x @ (W^T + I) + b   (residual already folded into the weight).
    # Padded lanes of x / rows+cols of W / b are zero -> padded lanes of y are 0.
    y = jnp.dot(x, w_ref[...], preferred_element_type=jnp.float32) + b_ref[...]

    # One-pass LayerNorm over the true d_model lanes.  Because padded lanes of
    # y are exactly zero, sums over the padded width equal sums over d_model.
    inv_d = jnp.float32(1.0 / d_model)
    s1 = jnp.sum(y, axis=-1, keepdims=True)
    s2 = jnp.sum(y * y, axis=-1, keepdims=True)
    mean = s1 * inv_d
    var = s2 * inv_d - mean * mean
    norm = (y - mean) * lax.rsqrt(var + EPS)

    # Affine.  gamma/beta are zero in padded lanes -> padded output lanes are 0.
    o_ref[...] = (norm * gamma_ref[...] + beta_ref[...]).astype(o_ref.dtype)


@functools.partial(jax.jit, static_argnames=("tm",))
def residual_forward(x, w, b, gamma, beta, *, tm=256):
    """x: (B, S, D).  w: (D, D) already transposed so sublayer(x) = x @ w + b.

    Returns LayerNorm(x + (x @ w + b)) with eps=1e-6 and affine params
    gamma/beta, matching nn.LayerNorm semantics (biased variance).
    """
    B, S, D = x.shape
    rows = B * S
    dtype = x.dtype

    # Fold the residual into the weight:  x + (x @ w + b) == x @ (w + I) + b.
    w_eff = w + jnp.eye(D, dtype=w.dtype)

    # Lane-dense layout: pad the feature dim to a multiple of 128 so the
    # output stores are unmasked.  Zero padding is exactly neutral (see kernel).
    d_pad = max(128, ((D + 127) // 128) * 128)

    # Row tiling: big tiles amortize the ~0.35 us/step pipeline overhead; clamp
    # for tiny inputs and pad rows so the grid divides evenly.  Padded rows see
    # x = 0 -> y = b -> a finite LayerNorm value that is sliced off below.
    rows8 = ((rows + 7) // 8) * 8
    tm_eff = min(tm, rows8)
    rows_pad = ((rows8 + tm_eff - 1) // tm_eff) * tm_eff

    x2 = jnp.zeros((rows_pad, d_pad), dtype).at[:rows, :D].set(x.reshape(rows, D))
    w2 = jnp.zeros((d_pad, d_pad), w_eff.dtype).at[:D, :D].set(w_eff)
    b2 = jnp.zeros((1, d_pad), jnp.float32).at[0, :D].set(b.astype(jnp.float32))
    g2 = jnp.zeros((1, d_pad), jnp.float32).at[0, :D].set(gamma.astype(jnp.float32))
    be2 = jnp.zeros((1, d_pad), jnp.float32).at[0, :D].set(beta.astype(jnp.float32))

    grid = (rows_pad // tm_eff,)
    itemsize = jnp.dtype(dtype).itemsize
    cost = pl.CostEstimate(
        flops=2 * rows_pad * d_pad * d_pad,
        transcendentals=rows_pad,
        bytes_accessed=(2 * rows_pad * d_pad + d_pad * d_pad) * itemsize
        + 3 * d_pad * 4,
    )

    kernel = functools.partial(_residual_ln_kernel, d_model=D)

    out = pl.pallas_call(
        kernel,
        out_shape=jax.ShapeDtypeStruct((rows_pad, d_pad), dtype),
        grid_spec=pltpu.PrefetchScalarGridSpec(
            num_scalar_prefetch=0,
            grid=grid,
            in_specs=[
                pl.BlockSpec((tm_eff, d_pad), lambda i: (i, 0)),  # x rows
                pl.BlockSpec((d_pad, d_pad), lambda i: (0, 0)),   # W^T + I (resident)
                pl.BlockSpec((1, d_pad), lambda i: (0, 0)),       # bias
                pl.BlockSpec((1, d_pad), lambda i: (0, 0)),       # gamma
                pl.BlockSpec((1, d_pad), lambda i: (0, 0)),       # beta
            ],
            out_specs=pl.BlockSpec((tm_eff, d_pad), lambda i: (i, 0)),
        ),
        compiler_params=pltpu.CompilerParams(
            dimension_semantics=("parallel",)),
        cost_estimate=cost,
    )(x2, w2, b2, g2, be2)

    return out[:rows, :D].reshape(B, S, D)


def _reference(x, w, b, gamma, beta):
    sub = jnp.einsum("bsd,de->bse", x, w) + b
    y = x + sub
    mean = jnp.mean(y, axis=-1, keepdims=True)
    var = jnp.mean((y - mean) ** 2, axis=-1, keepdims=True)
    return (y - mean) / jnp.sqrt(var + EPS) * gamma + beta


if __name__ == "__main__":
    key = jax.random.PRNGKey(0)
    k_x, k_w, k_b = jax.random.split(key, 3)

    B, S, D = 2, 8, 32  # batch, seq, d_model

    x = jax.random.normal(k_x, (B, S, D), dtype=jnp.float32)

    # Deterministic synthetic sublayer (Linear d_model -> d_model).  PyTorch
    # Linear computes x @ W^T + b with W of shape (out, in); we pass the
    # already-transposed weight so the kernel does x @ w + b.
    # TODO(synk): the mask=None branch with an arbitrary sublayer (e.g.
    # attention) is not representable as a single fused kernel; only the
    # Linear sublayer instantiation is fused here.
    w_pt = jax.random.normal(k_w, (D, D), dtype=jnp.float32) * (1.0 / jnp.sqrt(D))
    w = w_pt.T
    b = jax.random.normal(k_b, (D,), dtype=jnp.float32) * 0.1

    # nn.LayerNorm default init: weight=1, bias=0.
    gamma = jnp.ones((D,), dtype=jnp.float32)
    beta = jnp.zeros((D,), dtype=jnp.float32)

    out = residual_forward(x, w, b, gamma, beta)
    out = jax.block_until_ready(out)

    ref = _reference(x, w, b, gamma, beta)
    assert out.shape == (B, S, D)
    assert jnp.allclose(out, ref, atol=1e-4, rtol=1e-4), "mismatch vs reference"

    print("KERNEL_OK")
</pallas_src>

<mosaic_0001>
module attributes {stable_mosaic.version = 11 : i64} {
  func.func @_residual_ln_kernel(%arg0: i32, %arg1: memref<16x128xf32, #tpu.memory_space<vmem>>, %arg2: memref<128x128xf32, #tpu.memory_space<vmem>>, %arg3: memref<1x128xf32, #tpu.memory_space<vmem>>, %arg4: memref<1x128xf32, #tpu.memory_space<vmem>>, %arg5: memref<1x128xf32, #tpu.memory_space<vmem>>, %arg6: memref<16x128xf32, #tpu.memory_space<vmem>>) attributes {dimension_semantics = [#tpu.dimension_semantics<parallel>], iteration_bounds = array<i64: 1>, scalar_prefetch = 0 : i64, scratch_operands = 0 : i64, tpu.core_type = #tpu.core_type<tc>, window_params = [{transform_indices = @transform_0, window_bounds = array<i64: 16, 128>}, {pipeline_mode = #tpu.pipeline_mode<synchronous>, transform_indices = @transform_1, window_bounds = array<i64: 128, 128>}, {pipeline_mode = #tpu.pipeline_mode<synchronous>, transform_indices = @transform_2, window_bounds = array<i64: 1, 128>}, {pipeline_mode = #tpu.pipeline_mode<synchronous>, transform_indices = @transform_3, window_bounds = array<i64: 1, 128>}, {pipeline_mode = #tpu.pipeline_mode<synchronous>, transform_indices = @transform_4, window_bounds = array<i64: 1, 128>}, {transform_indices = @transform_5, window_bounds = array<i64: 16, 128>}]} {
    %c0 = arith.constant 0 : index
    %c0_0 = arith.constant 0 : index
    %0 = vector.load %arg1[%c0, %c0_0] : memref<16x128xf32, #tpu.memory_space<vmem>>, vector<16x128xf32>
    %c0_1 = arith.constant 0 : index
    %c0_2 = arith.constant 0 : index
    %1 = vector.load %arg2[%c0_1, %c0_2] : memref<128x128xf32, #tpu.memory_space<vmem>>, vector<128x128xf32>
    %cst = arith.constant dense<0.000000e+00> : vector<16x128xf32>
    %2 = tpu.matmul %0, %1, %cst {dimension_numbers = #tpu.dot_dimension_numbers<[1], [0], [0], [1], [0, 0, 1, 1], [], []>} : vector<16x128xf32>, vector<128x128xf32>, vector<16x128xf32> -> vector<16x128xf32>
    %c0_3 = arith.constant 0 : index
    %c0_4 = arith.constant 0 : index
    %3 = vector.load %arg3[%c0_3, %c0_4] : memref<1x128xf32, #tpu.memory_space<vmem>>, vector<1x128xf32>
    %4 = vector.broadcast %3 : vector<1x128xf32> to vector<16x128xf32>
    %5 = arith.addf %2, %4 : vector<16x128xf32>
    %cst_5 = arith.constant dense<0.000000e+00> : vector<16xf32>
    %6 = vector.multi_reduction <add>, %5, %cst_5 [1] : vector<16x128xf32> to vector<16xf32>
    %7 = vector.shape_cast %6 : vector<16xf32> to vector<16x1xf32>
    %8 = arith.mulf %5, %5 : vector<16x128xf32>
    %cst_6 = arith.constant dense<0.000000e+00> : vector<16xf32>
    %9 = vector.multi_reduction <add>, %8, %cst_6 [1] : vector<16x128xf32> to vector<16xf32>
    %10 = vector.shape_cast %9 : vector<16xf32> to vector<16x1xf32>
    %cst_7 = arith.constant 3.125000e-02 : f32
    %11 = vector.broadcast %cst_7 : f32 to vector<16x1xf32>
    %12 = arith.mulf %7, %11 : vector<16x1xf32>
    %cst_8 = arith.constant 3.125000e-02 : f32
    %13 = vector.broadcast %cst_8 : f32 to vector<16x1xf32>
    %14 = arith.mulf %10, %13 : vector<16x1xf32>
    %15 = arith.mulf %12, %12 : vector<16x1xf32>
    %16 = arith.subf %14, %15 : vector<16x1xf32>
    %17 = vector.broadcast %12 : vector<16x1xf32> to vector<16x128xf32>
    %18 = arith.subf %5, %17 : vector<16x128xf32>
    %cst_9 = arith.constant 9.99999997E-7 : f32
    %19 = vector.broadcast %cst_9 : f32 to vector<16x1xf32>
    %20 = arith.addf %16, %19 : vector<16x1xf32>
    %21 = math.rsqrt %20 : vector<16x1xf32>
    %22 = vector.broadcast %21 : vector<16x1xf32> to vector<16x128xf32>
    %23 = arith.mulf %18, %22 : vector<16x128xf32>
    %c0_10 = arith.constant 0 : index
    %c0_11 = arith.constant 0 : index
    %24 = vector.load %arg4[%c0_10, %c0_11] : memref<1x128xf32, #tpu.memory_space<vmem>>, vector<1x128xf32>
    %25 = vector.broadcast %24 : vector<1x128xf32> to vector<16x128xf32>
    %26 = arith.mulf %23, %25 : vector<16x128xf32>
    %c0_12 = arith.constant 0 : index
    %c0_13 = arith.constant 0 : index
    %27 = vector.load %arg5[%c0_12, %c0_13] : memref<1x128xf32, #tpu.memory_space<vmem>>, vector<1x128xf32>
    %28 = vector.broadcast %27 : vector<1x128xf32> to vector<16x128xf32>
    %29 = arith.addf %26, %28 : vector<16x128xf32>
    %c0_14 = arith.constant 0 : index
    %c0_15 = arith.constant 0 : index
    %30 = vector.load %arg6[%c0_14, %c0_15] : memref<16x128xf32, #tpu.memory_space<vmem>>, vector<16x128xf32>
    tpu.vector_store %arg6[%c0_14, %c0_15], %29 {strides = array<i32>} : memref<16x128xf32, #tpu.memory_space<vmem>>, vector<16x128xf32>,
    return
  }
  func.func @transform_0(%arg0: i32) -> (i32, i32) {
    %c0_i32 = arith.constant 0 : i32
    %c0_i32_0 = arith.constant 0 : i32
    return %arg0, %c0_i32 : i32, i32
  }
  func.func @transform_1(%arg0: i32) -> (i32, i32) {
    %c0_i32 = arith.constant 0 : i32
    %c0_i32_0 = arith.constant 0 : i32
    %c0_i32_1 = arith.constant 0 : i32
    return %c0_i32, %c0_i32_0 : i32, i32
  }
  func.func @transform_2(%arg0: i32) -> (i32, i32) {
    %c0_i32 = arith.constant 0 : i32
    %c0_i32_0 = arith.constant 0 : i32
    %c0_i32_1 = arith.constant 0 : i32
    return %c0_i32, %c0_i32_0 : i32, i32
  }
  func.func @transform_3(%arg0: i32) -> (i32, i32) {
    %c0_i32 = arith.constant 0 : i32
    %c0_i32_0 = arith.constant 0 : i32
    %c0_i32_1 = arith.constant 0 : i32
    return %c0_i32, %c0_i32_0 : i32, i32
  }
  func.func @transform_4(%arg0: i32) -> (i32, i32) {
    %c0_i32 = arith.constant 0 : i32
    %c0_i32_0 = arith.constant 0 : i32
    %c0_i32_1 = arith.constant 0 : i32
    return %c0_i32, %c0_i32_0 : i32, i32
  }
  func.func @transform_5(%arg0: i32) -> (i32, i32) {
    %c0_i32 = arith.constant 0 : i32
    %c0_i32_0 = arith.constant 0 : i32
    return %arg0, %c0_i32 : i32, i32
  }
}

</mosaic_0001>

<bundles_post_ra>
// kernel: residual_forward.1
= control target key start
LH: loop header
LB: loop body
LE: loop exit
PB: predicated region body
PF: predicated region fallthrough
CT: control target
= control target key end

     0   :  { %s329_s1 = inlined_call_operand.vmem [shape: f32[128,128], index: 1, kind: input, shape index: {}]   ;;  %s330_s0 = inlined_call_operand.vmem [shape: f32[16,128], index: 0, kind: input, shape index: {}]   ;;  %s331_s2 = inlined_call_operand.vmem [shape: f32[1,128], index: 2, kind: input, shape index: {}]   ;;  %s332_s3 = inlined_call_operand.vmem [shape: f32[1,128], index: 3, kind: input, shape index: {}]   ;;  %s333_s4 = inlined_call_operand.vmem [shape: f32[1,128], index: 4, kind: input, shape index: {}]   ;;  %s334_s5 = inlined_call_operand.vmem [shape: f32[16,128], index: 5, kind: output, shape index: {}]  }
   0x1   :  { %v37_v0 = vld [vmem:[%s329_s1 + $0x78] sm:$0xff]  ;;  %v36_v1 = vld [vmem:[%s329_s1 + $0x70] sm:$0xff]  ;;  %v35_v2 = vld [vmem:[%s329_s1 + $0x68] sm:$0xff] }
   0x2   :  { %191 = vmatprep.subr.mxu0 %v37_v0  ;;  %v34_v3 = vld [vmem:[%s329_s1 + $0x60] sm:$0xff]  ;;  %v33_v5 = vld [vmem:[%s329_s1 + $0x58] sm:$0xff]  ;;  %v32_v6 = vld [vmem:[%s329_s1 + $0x50] sm:$0xff] }
   0x3   :  { %192 = vmatpush3.msra.mxu0 %v37_v0  ;;  %v20_v4 = vld [vmem:[%s330_s0] sm:$0xff]  ;;  %v31_v7 = vld [vmem:[%s329_s1 + $0x48] sm:$0xff]  ;;  %v29_v9 = vld [vmem:[%s329_s1 + $0x38] sm:$0xff] }
   0x4   :  { %193 = vmatprep.subr.mxu0 %v36_v1  ;;  %223 = vmatprep.mubr.f32.mxu0 %v20_v4  ;;  %v30_v8 = vld [vmem:[%s329_s1 + $0x40] sm:$0xff]  ;;  %v28_v10 = vld [vmem:[%s329_s1 + $0x30] sm:$0xff]  ;;  %v27_v11 = vld [vmem:[%s329_s1 + $0x28] sm:$0xff] }
   0x5   :  { %194 = vmatpush3.msra.mxu0 %v36_v1  ;;  %v26_v12 = vld [vmem:[%s329_s1 + $0x20] sm:$0xff]  ;;  %v25_v13 = vld [vmem:[%s329_s1 + $0x18] sm:$0xff]  ;;  %v24_v14 = vld [vmem:[%s329_s1 + $0x10] sm:$0xff] }
   0x6   :  { %195 = vmatprep.subr.mxu0 %v35_v2  ;;  %v23_v15 = vld [vmem:[%s329_s1 + $0x8] sm:$0xff]  ;;  %v22_v16 = vld [vmem:[%s329_s1] sm:$0xff] }
   0x7   :  { %196 = vmatpush3.msra.mxu0 %v35_v2  ;;  %v21_v17 = vld [vmem:[%s330_s0 + $0x8] sm:$0xff]  ;;  %v170_v19 = vld [vmem:[%s331_s2] ss:$0 sm:$0xff] }
   0x8   :  { %197 = vmatprep.subr.mxu0 %v34_v3  ;;  %v171_v41 = vld [vmem:[%s332_s3] ss:$0 sm:$0xff] }
   0x9   :  { %198 = vmatpush3.msra.mxu0 %v34_v3  ;;  %v172_v43 = vld [vmem:[%s333_s4] ss:$0 sm:$0xff] }
   0xa   :  { %199 = vmatprep.subr.mxu0 %v33_v5 }
   0xb   :  { %200 = vmatpush3.msra.mxu0 %v33_v5 }
   0xc   :  { %201 = vmatprep.subr.mxu0 %v32_v6 }
   0xd   :  { %202 = vmatpush3.msra.mxu0 %v32_v6 }
   0xe   :  { %203 = vmatprep.subr.mxu0 %v31_v7 }
   0xf   :  { %204 = vmatpush3.msra.mxu0 %v31_v7 }
  0x10   :  { %205 = vmatprep.subr.mxu0 %v30_v8 }
  0x11   :  { %206 = vmatpush3.msra.mxu0 %v30_v8 }
  0x12   :  { %207 = vmatprep.subr.mxu0 %v29_v9 }
  0x13   :  { %208 = vmatpush3.msra.mxu0 %v29_v9 }
  0x14   :  { %209 = vmatprep.subr.mxu0 %v28_v10 }
  0x15   :  { %210 = vmatpush3.msra.mxu0 %v28_v10 }
  0x16   :  { %211 = vmatprep.subr.mxu0 %v27_v11 }
  0x17   :  { %212 = vmatpush3.msra.mxu0 %v27_v11 }
  0x18   :  { %213 = vmatprep.subr.mxu0 %v26_v12 }
  0x19   :  { %214 = vmatpush3.msra.mxu0 %v26_v12 }
  0x1a   :  { %215 = vmatprep.subr.mxu0 %v25_v13 }
  0x1b   :  { %216 = vmatpush3.msra.mxu0 %v25_v13 }
  0x1c   :  { %217 = vmatprep.subr.mxu0 %v24_v14 }
  0x1d   :  { %218 = vmatpush3.msra.mxu0 %v24_v14 }
  0x1e   :  { %219 = vmatprep.subr.mxu0 %v23_v15 }
  0x1f   :  { %220 = vmatpush3.msra.mxu0 %v23_v15 }
  0x20   :  { %221 = vmatprep.subr.mxu0 %v22_v16 }
  0x21   :  { %222 = vmatpush3.msra.mxu0 %v22_v16 }
  0x22   :  { %224 = vmatmul.mubr.f32.vlgmr.msra.gmra.mxu0 %v21_v17 }
  0xe2   :  { %v225_v18 = vpop.f32.mrf.mxu0 }
  0xe3   :  { %v117_v22 = vadd.f32 %v225_v18, %v170_v19 }
  0xe4   :  { %v111_v20 = vpop.f32.mrf.mxu0 }
  0xe5   :  { %v112_v21 = vadd.f32 %v170_v19, %v111_v20  ;;  %v125_v24 = vmul.f32 %v117_v22, %v117_v22 }
  0xe7   :  { %120 = vadd.xlane.f32.xlu0 %v112_v21  ;;  %v124_v23 = vmul.f32 %v112_v21, %v112_v21 }
  0xe9   :  { %126 = vadd.xlane.f32.xlu1 %v124_v23 }
  0xeb   :  { %122 = vadd.xlane.f32.xlu0 %v117_v22 }
  0xed   :  { %128 = vadd.xlane.f32.xlu1 %v125_v24 }
 0x170   :  { %v121_v25 = vpop.xlane.xlu0 %120 }
 0x171   :  { %v130_v26 = vmul.f32 0.03125, %v121_v25 }
 0x172   :  { %v127_v27 = vpop.xlane.xlu1 %126 }
 0x173   :  { %v134_v28 = vmul.f32 %v130_v26, %v130_v26  ;;  %v132_v29 = vmul.f32 0.03125, %v127_v27  ;;  %v138_v39 = vsub.f32 %v112_v21, %v130_v26 }
 0x174   :  { %v123_v30 = vpop.xlane.xlu0 %122 }
 0x175   :  { %v136_v31 = vsub.f32 %v132_v29, %v134_v28  ;;  %v131_v32 = vmul.f32 0.03125, %v123_v30 }
 0x176   :  { %v129_v33 = vpop.xlane.xlu1 %128 }
 0x177   :  { %v140_v34 = vadd.f32 1e-06, %v136_v31  ;;  %v135_v35 = vmul.f32 %v131_v32, %v131_v32  ;;  %v133_v36 = vmul.f32 0.03125, %v129_v33  ;;  %v139_v45 = vsub.f32 %v117_v22, %v131_v32 }
 0x179   :  { %226 = vrsqrt.f32 %v140_v34  ;;  %v137_v37 = vsub.f32 %v133_v36, %v135_v35 }
 0x17b   :  { %v141_v38 = vadd.f32 1e-06, %v137_v37 }
 0x17d   :  { %228 = vrsqrt.f32 %v141_v38 }
 0x186   :  { %v227_v40 = vpop.eup %226 }
 0x187   :  { %v144_v42 = vmul.f32 %v227_v40, %v138_v39 }
 0x189   :  { %v153_v44 = vmul.f32 %v171_v41, %v144_v42 }
 0x18a   :  { %v229_v46 = vpop.eup %228 }
 0x18b   :  { %v162_v47 = vadd.f32 %v172_v43, %v153_v44  ;;  %v145_v48 = vmul.f32 %v229_v46, %v139_v45 }
 0x18d   :  { %164 = vst [vmem:[%s334_s5] sm:$0xff] %v162_v47  ;;  %v154_v49 = vmul.f32 %v171_v41, %v145_v48 }
 0x18f   :  { %v163_v50 = vadd.f32 %v172_v43, %v154_v49 }
 0x191   :  { %165 = vst [vmem:[%s334_s5 + $0x8] sm:$0xff] %v163_v50 }

</bundles_post_ra>
